<compile_context>
chip_gen: v5e
topology: v5e:2x2
jax: 0.10.0
libtpu: 0.0.40
codegen_flags: <defaults>
</compile_context>

<pallas_src>
import functools

import jax
import jax.numpy as jnp
from jax.experimental import pallas as pl
from jax.experimental.pallas import tpu as pltpu


# ---------------------------------------------------------------------------
# Fused kernel factory: (embedding+proj0) + stacked RNN + folded head + view +
# classifier + softmax, all in one gridless pallas_call.
# ---------------------------------------------------------------------------
def make_fused_kernel(S, B, num_layers):
    n_in = 4 + 3 * (num_layers - 1) + 6

    dot = functools.partial(jnp.dot,
                            precision=jax.lax.Precision.DEFAULT,
                            preferred_element_type=jnp.float32)

    def kernel(*refs):
        in_refs = refs[:n_in]
        out_ref = refs[n_in]          # (B, 2) output
        seq_ref = refs[n_in + 1]      # (S*B, H) VMEM scratch, reused per layer

        ids_ref, table0_ref, b0_ref, whh0_ref = in_refs[:4]
        layer_refs = in_refs[4:4 + 3 * (num_layers - 1)]
        (w13_ref, b13_ref, w2r0_ref, w2r1_ref,
         sel_ref, b2_ref) = in_refs[4 + 3 * (num_layers - 1):]

        SB = S * B
        V1, H = table0_ref.shape

        # Hoisted weight loads (once, outside the unrolled loops).
        whh = [whh0_ref[...]]
        wih = [None]
        b_in = [None]
        for j in range(num_layers - 1):
            wih.append(layer_refs[3 * j + 0][...])
            b_in.append(layer_refs[3 * j + 1][...])
            whh.append(layer_refs[3 * j + 2][...])

        # Embedding lookup fused with layer-0 input projection: ONE MXU op for
        # all timesteps (table0 = emb @ W_ih0^T precomputed offline; padding
        # row of the embedding is zero so it contributes zero here).
        ids = jnp.broadcast_to(ids_ref[...], (SB, V1))
        onehot = (ids == jax.lax.broadcasted_iota(jnp.int32, (SB, V1), 1)
                  ).astype(jnp.float32)                               # (SB, V1)
        u = dot(onehot, table0_ref[...]) + b0_ref[...]                # (SB, H)

        # Layer-major stacked tanh RNN.  Per step: one (B,H)x(H,H) dot + tanh.
        for l in range(num_layers):
            if l > 0:
                # Batched input projection for the whole sequence: one MXU op.
                u = dot(seq_ref[...], wih[l]) + b_in[l]               # (SB, H)
            h = jnp.zeros((B, H), jnp.float32)
            for t in range(S):
                h = jnp.tanh(u[t * B:(t + 1) * B, :] + dot(h, whh[l]))
                seq_ref[t * B:(t + 1) * B, :] = h                     # 32-lane row store
            # TODO(synk): on v5e/v6e, skew adjacent layer recurrences by one
            # step to overlap two independent MXU chains (MRF pop latency).

        # Head: Linear1 -> Linear3 folded offline; one batched matmul.
        y = dot(seq_ref[...], w13_ref[...]) + b13_ref[...]            # (SB, 2)

        # torch .view([B, 2S]) + Linear2 without any reshape/scatter:
        #   logits[b, c] = b2[c] + sum_{s,f} y[b*S+s, f] * w2t[2s+f, c]
        # w2r0/w2r1 hold w2t rows de-interleaved & tiled per batch block; sel
        # is the 0/1 (B, SB) segment-sum matrix.
        contrib = y[:, 0:1] * w2r0_ref[...] + y[:, 1:2] * w2r1_ref[...]  # (SB, 2) VPU
        logits = dot(sel_ref[...], contrib) + b2_ref[...]                # (B, 2)

        # softmax(dim=1)
        m = jnp.max(logits, axis=1, keepdims=True)
        e = jnp.exp(logits - m)
        out_ref[...] = (e / jnp.sum(e, axis=1, keepdims=True)).astype(out_ref.dtype)

    return kernel, n_in


# ---------------------------------------------------------------------------
# Parameter construction (mirrors the PyTorch module's shapes).
# ---------------------------------------------------------------------------
def init_params(key, vocabulary_len, text_size, input_size, hidden_size, num_layers):
    keys = jax.random.split(key, 4 + 4 * num_layers)
    ki = iter(range(len(keys)))

    # Embedding(vocab_len + 1, input_size, padding_idx=vocab_len)
    emb = jax.random.normal(keys[next(ki)], (vocabulary_len + 1, input_size), jnp.float32)
    emb = emb.at[vocabulary_len].set(0.0)

    rnn = []
    k = 1.0 / jnp.sqrt(hidden_size)
    for layer in range(num_layers):
        in_sz = input_size if layer == 0 else hidden_size
        w_ih = jax.random.uniform(keys[next(ki)], (hidden_size, in_sz), jnp.float32, -k, k)
        w_hh = jax.random.uniform(keys[next(ki)], (hidden_size, hidden_size), jnp.float32, -k, k)
        b_ih = jax.random.uniform(keys[next(ki)], (hidden_size,), jnp.float32, -k, k)
        b_hh = jax.random.uniform(keys[next(ki)], (hidden_size,), jnp.float32, -k, k)
        rnn.append((w_ih, w_hh, b_ih, b_hh))

    def linear_init(key, out_f, in_f):
        kk = 1.0 / jnp.sqrt(in_f)
        k_w, k_b = jax.random.split(key)
        w = jax.random.uniform(k_w, (out_f, in_f), jnp.float32, -kk, kk)
        b = jax.random.uniform(k_b, (out_f,), jnp.float32, -kk, kk)
        return w, b

    lin1 = linear_init(keys[next(ki)], 300, hidden_size)
    lin2 = linear_init(keys[next(ki)], 2, text_size * 2)
    lin3 = linear_init(keys[next(ki)], 2, 300)
    return dict(emb=emb, rnn=rnn, lin1=lin1, lin2=lin2, lin3=lin3)


def prepare_params(params, *, text_size, batch_size):
    """One-time algebraic folds / transposes (NOT part of the per-call graph)."""
    HI = jax.lax.Precision.HIGHEST
    S, B = text_size, batch_size

    w_ih0, w_hh0, b_ih0, b_hh0 = params["rnn"][0]
    prep = {
        # Embedding folded into layer-0 input projection (padding row stays 0).
        "table0": jnp.dot(params["emb"], w_ih0.T, precision=HI),          # (V1, H)
        "b0": (b_ih0 + b_hh0).reshape(1, -1),                             # (1, H)
        "whh0": w_hh0.T,                                                  # (H, H)
    }
    layers = []
    for (w_ih, w_hh, b_ih, b_hh) in params["rnn"][1:]:
        layers.append((w_ih.T, (b_ih + b_hh).reshape(1, -1), w_hh.T))
    prep["layers"] = layers

    # Linear1 -> Linear3 folded (no nonlinearity in between): exact algebra.
    w1, b1 = params["lin1"]        # (300, H), (300,)
    w3, b3 = params["lin3"]        # (2, 300), (2,)
    prep["w13"] = jnp.dot(w1.T, w3.T, precision=HI)                       # (H, 2)
    prep["b13"] = (jnp.dot(b1, w3.T, precision=HI) + b3).reshape(1, -1)   # (1, 2)

    # Linear2 applied to the torch .view([B, 2S]), re-expressed so the kernel
    # never reshapes or scatters:  view[b, 2s+f] = y[b*S + s, f]
    # (y rows are in (t, b) order; its flat order equals the (S, B, 2) tensor).
    w2, b2 = params["lin2"]        # (2, 2S), (2,)
    w2t = w2.T                     # (2S, 2)
    prep["w2r0"] = jnp.tile(w2t[0::2, :], (B, 1))   # (S*B, 2): row r -> w2t[2*(r%S)]
    prep["w2r1"] = jnp.tile(w2t[1::2, :], (B, 1))   # (S*B, 2): row r -> w2t[2*(r%S)+1]
    prep["sel"] = (jnp.arange(S * B)[None, :] // S
                   == jnp.arange(B)[:, None]).astype(jnp.float32)         # (B, S*B)
    prep["b2"] = b2.reshape(1, -1)                                        # (1, 2)
    return prep


# ---------------------------------------------------------------------------
# Forward pass (matches RNN_imdb.forward) — single gridless pallas_call.
# ---------------------------------------------------------------------------
def rnn_imdb_forward(prep, context, *, batch_size, text_size, num_layers):
    S, B = context.shape
    # torch's .view([batch_size, text_size*2]) silently requires these:
    assert S == text_size and B == batch_size, "view() shape mismatch"
    SB = S * B
    H = prep["whh0"].shape[0]
    V1 = prep["table0"].shape[0]

    ids = context.reshape(SB, 1).astype(jnp.int32)   # rows in (t, b) order
    layer_flat = [a for triple in prep["layers"] for a in triple]
    inputs = [ids, prep["table0"], prep["b0"], prep["whh0"], *layer_flat,
              prep["w13"], prep["b13"], prep["w2r0"], prep["w2r1"],
              prep["sel"], prep["b2"]]

    kernel, n_in = make_fused_kernel(S, B, num_layers)
    assert n_in == len(inputs)

    flops = 2 * (SB * V1 * H                      # fused embedding / layer-0 proj
                 + num_layers * S * B * H * H     # recurrences
                 + (num_layers - 1) * SB * H * H  # batched inter-layer projections
                 + SB * H * 2                     # folded Linear1->Linear3 head
                 + B * SB * 2)                    # segment-sum classifier
    transcendentals = num_layers * SB * H + B * 2
    bytes_accessed = (sum(int(x.size) * x.dtype.itemsize for x in inputs)
                      + B * 2 * 4)

    vmem = pltpu.MemorySpace.VMEM
    return pl.pallas_call(
        kernel,
        out_shape=jax.ShapeDtypeStruct((B, 2), jnp.float32),
        in_specs=[pl.BlockSpec(memory_space=vmem)] * len(inputs),
        out_specs=pl.BlockSpec(memory_space=vmem),
        scratch_shapes=[pltpu.VMEM((SB, H), jnp.float32)],
        cost_estimate=pl.CostEstimate(flops=flops,
                                      transcendentals=transcendentals,
                                      bytes_accessed=bytes_accessed),
        # NOTE(v7x): for realistic batches add a leading "parallel" grid axis
        # (dimension_semantics) so both TensorCores are used; pointless at B=2.
    )(*inputs)


# ---------------------------------------------------------------------------
# Pure-JAX reference (mirrors the PyTorch module exactly, full-f32 matmuls).
# ---------------------------------------------------------------------------
def reference_forward(params, context, *, batch_size, text_size):
    HI = jax.lax.Precision.HIGHEST
    x = jnp.take(params["emb"], context, axis=0)            # (S, B, I)
    S, B, _ = x.shape
    seq = x
    for (w_ih, w_hh, b_ih, b_hh) in params["rnn"]:
        H = w_hh.shape[0]
        h = jnp.zeros((B, H), jnp.float32)
        outs = []
        for t in range(S):
            h = jnp.tanh(jnp.dot(seq[t], w_ih.T, precision=HI)
                         + jnp.dot(h, w_hh.T, precision=HI) + b_ih + b_hh)
            outs.append(h)
        seq = jnp.stack(outs, axis=0)                        # (S, B, H)
    w1, b1 = params["lin1"]
    w3, b3 = params["lin3"]
    y = jnp.dot(seq, w1.T, precision=HI) + b1
    y = jnp.dot(y, w3.T, precision=HI) + b3                  # (S, B, 2)
    y = y.reshape(batch_size, text_size * 2)                 # torch .view quirk
    w2, b2 = params["lin2"]
    logits = jnp.dot(y, w2.T, precision=HI) + b2
    return jax.nn.softmax(logits, axis=1)


if __name__ == "__main__":
    vocabulary_len = 50
    batch_size = 2
    text_size = 8          # sequence length (must equal text_size for the view)
    input_size = 16
    hidden_size = 32
    num_layers = 2

    key = jax.random.PRNGKey(0)
    k_params, k_ctx = jax.random.split(key)
    params = init_params(k_params, vocabulary_len, text_size, input_size,
                         hidden_size, num_layers)
    # Algebraic folds (emb@W_ih0^T, W1^T@W3^T, de-interleaved W2) done once.
    prep = prepare_params(params, text_size=text_size, batch_size=batch_size)

    # context: (text_size, batch) int32 tokens in [0, vocab_len] (vocab_len = padding idx)
    context = jax.random.randint(k_ctx, (text_size, batch_size), 0,
                                 vocabulary_len + 1, dtype=jnp.int32)

    fwd = jax.jit(functools.partial(rnn_imdb_forward, batch_size=batch_size,
                                    text_size=text_size, num_layers=num_layers))
    out = jax.block_until_ready(fwd(prep, context))

    assert out.shape == (batch_size, 2)
    assert bool(jnp.all(jnp.isfinite(out)))
    assert bool(jnp.allclose(jnp.sum(out, axis=1), 1.0, atol=1e-5))

    # Cross-check the fused kernel (DEFAULT-precision dots) against the full-f32
    # reference of the module; tolerance covers the single-pass bf16 MXU rounding.
    ref = jax.jit(functools.partial(reference_forward, batch_size=batch_size,
                                    text_size=text_size))(params, context)
    assert bool(jnp.allclose(out, ref, atol=5e-3, rtol=5e-3)), (out, ref)

    print("KERNEL_OK")
</pallas_src>

<mosaic_0001>
module attributes {stable_mosaic.version = 11 : i64} {
  func.func @kernel(%arg0: memref<16x1xi32, #tpu.memory_space<vmem>>, %arg1: memref<51x32xf32, #tpu.memory_space<vmem>>, %arg2: memref<1x32xf32, #tpu.memory_space<vmem>>, %arg3: memref<32x32xf32, #tpu.memory_space<vmem>>, %arg4: memref<32x32xf32, #tpu.memory_space<vmem>>, %arg5: memref<1x32xf32, #tpu.memory_space<vmem>>, %arg6: memref<32x32xf32, #tpu.memory_space<vmem>>, %arg7: memref<32x2xf32, #tpu.memory_space<vmem>>, %arg8: memref<1x2xf32, #tpu.memory_space<vmem>>, %arg9: memref<16x2xf32, #tpu.memory_space<vmem>>, %arg10: memref<16x2xf32, #tpu.memory_space<vmem>>, %arg11: memref<2x16xf32, #tpu.memory_space<vmem>>, %arg12: memref<1x2xf32, #tpu.memory_space<vmem>>, %arg13: memref<2x2xf32, #tpu.memory_space<vmem>>, %arg14: memref<16x32xf32, #tpu.memory_space<vmem>>) attributes {dimension_semantics = [], scalar_prefetch = 0 : i64, scratch_operands = 1 : i64, tpu.core_type = #tpu.core_type<tc>} {
    %c0 = arith.constant 0 : index
    %c0_0 = arith.constant 0 : index
    %0 = vector.load %arg3[%c0, %c0_0] : memref<32x32xf32, #tpu.memory_space<vmem>>, vector<32x32xf32>
    %c0_1 = arith.constant 0 : index
    %c0_2 = arith.constant 0 : index
    %1 = vector.load %arg4[%c0_1, %c0_2] : memref<32x32xf32, #tpu.memory_space<vmem>>, vector<32x32xf32>
    %c0_3 = arith.constant 0 : index
    %c0_4 = arith.constant 0 : index
    %2 = vector.load %arg5[%c0_3, %c0_4] : memref<1x32xf32, #tpu.memory_space<vmem>>, vector<1x32xf32>
    %c0_5 = arith.constant 0 : index
    %c0_6 = arith.constant 0 : index
    %3 = vector.load %arg6[%c0_5, %c0_6] : memref<32x32xf32, #tpu.memory_space<vmem>>, vector<32x32xf32>
    %c0_7 = arith.constant 0 : index
    %c0_8 = arith.constant 0 : index
    %4 = vector.load %arg0[%c0_7, %c0_8] : memref<16x1xi32, #tpu.memory_space<vmem>>, vector<16x1xi32>
    %5 = vector.shape_cast %4 : vector<16x1xi32> to vector<16x1xi32>
    %6 = vector.broadcast %5 : vector<16x1xi32> to vector<16x51xi32>
    %7 = tpu.iota {dimensions = array<i32: 1>} : vector<16x51xi32>
    %8 = arith.cmpi eq, %6, %7 : vector<16x51xi32>
    %9 = arith.extui %8 : vector<16x51xi1> to vector<16x51xi32>
    %10 = arith.sitofp %9 : vector<16x51xi32> to vector<16x51xf32>
    %c0_9 = arith.constant 0 : index
    %c0_10 = arith.constant 0 : index
    %11 = vector.load %arg1[%c0_9, %c0_10] : memref<51x32xf32, #tpu.memory_space<vmem>>, vector<51x32xf32>
    %cst = arith.constant dense<0.000000e+00> : vector<16x32xf32>
    %12 = tpu.matmul %10, %11, %cst {dimension_numbers = #tpu.dot_dimension_numbers<[1], [0], [0], [1], [0, 0, 1, 1], [], []>} : vector<16x51xf32>, vector<51x32xf32>, vector<16x32xf32> -> vector<16x32xf32>
    %c0_11 = arith.constant 0 : index
    %c0_12 = arith.constant 0 : index
    %13 = vector.load %arg2[%c0_11, %c0_12] : memref<1x32xf32, #tpu.memory_space<vmem>>, vector<1x32xf32>
    %14 = vector.broadcast %13 : vector<1x32xf32> to vector<16x32xf32>
    %15 = arith.addf %12, %14 : vector<16x32xf32>
    %cst_13 = arith.constant 0.000000e+00 : f32
    %16 = vector.broadcast %cst_13 : f32 to vector<2x32xf32>
    %17 = vector.extract_strided_slice %15 {offsets = [0, 0], sizes = [2, 32], strides = [1, 1]} : vector<16x32xf32> to vector<2x32xf32>
    %cst_14 = arith.constant dense<0.000000e+00> : vector<2x32xf32>
    %18 = tpu.matmul %16, %0, %cst_14 {dimension_numbers = #tpu.dot_dimension_numbers<[1], [0], [0], [1], [0, 0, 1, 1], [], []>} : vector<2x32xf32>, vector<32x32xf32>, vector<2x32xf32> -> vector<2x32xf32>
    %19 = arith.addf %17, %18 : vector<2x32xf32>
    %20 = math.tanh %19 : vector<2x32xf32>
    %c0_15 = arith.constant 0 : index
    %c0_16 = arith.constant 0 : index
    %21 = vector.load %arg14[%c0_15, %c0_16] : memref<16x32xf32, #tpu.memory_space<vmem>>, vector<2x32xf32>
    tpu.vector_store %arg14[%c0_15, %c0_16], %20 {strides = array<i32>} : memref<16x32xf32, #tpu.memory_space<vmem>>, vector<2x32xf32>,
    %22 = vector.extract_strided_slice %15 {offsets = [2, 0], sizes = [2, 32], strides = [1, 1]} : vector<16x32xf32> to vector<2x32xf32>
    %cst_17 = arith.constant dense<0.000000e+00> : vector<2x32xf32>
    %23 = tpu.matmul %20, %0, %cst_17 {dimension_numbers = #tpu.dot_dimension_numbers<[1], [0], [0], [1], [0, 0, 1, 1], [], []>} : vector<2x32xf32>, vector<32x32xf32>, vector<2x32xf32> -> vector<2x32xf32>
    %24 = arith.addf %22, %23 : vector<2x32xf32>
    %25 = math.tanh %24 : vector<2x32xf32>
    %c2 = arith.constant 2 : index
    %c0_18 = arith.constant 0 : index
    %26 = vector.load %arg14[%c2, %c0_18] : memref<16x32xf32, #tpu.memory_space<vmem>>, vector<2x32xf32>
    tpu.vector_store %arg14[%c2, %c0_18], %25 {strides = array<i32>} : memref<16x32xf32, #tpu.memory_space<vmem>>, vector<2x32xf32>,
    %27 = vector.extract_strided_slice %15 {offsets = [4, 0], sizes = [2, 32], strides = [1, 1]} : vector<16x32xf32> to vector<2x32xf32>
    %cst_19 = arith.constant dense<0.000000e+00> : vector<2x32xf32>
    %28 = tpu.matmul %25, %0, %cst_19 {dimension_numbers = #tpu.dot_dimension_numbers<[1], [0], [0], [1], [0, 0, 1, 1], [], []>} : vector<2x32xf32>, vector<32x32xf32>, vector<2x32xf32> -> vector<2x32xf32>
    %29 = arith.addf %27, %28 : vector<2x32xf32>
    %30 = math.tanh %29 : vector<2x32xf32>
    %c4 = arith.constant 4 : index
    %c0_20 = arith.constant 0 : index
    %31 = vector.load %arg14[%c4, %c0_20] : memref<16x32xf32, #tpu.memory_space<vmem>>, vector<2x32xf32>
    tpu.vector_store %arg14[%c4, %c0_20], %30 {strides = array<i32>} : memref<16x32xf32, #tpu.memory_space<vmem>>, vector<2x32xf32>,
    %32 = vector.extract_strided_slice %15 {offsets = [6, 0], sizes = [2, 32], strides = [1, 1]} : vector<16x32xf32> to vector<2x32xf32>
    %cst_21 = arith.constant dense<0.000000e+00> : vector<2x32xf32>
    %33 = tpu.matmul %30, %0, %cst_21 {dimension_numbers = #tpu.dot_dimension_numbers<[1], [0], [0], [1], [0, 0, 1, 1], [], []>} : vector<2x32xf32>, vector<32x32xf32>, vector<2x32xf32> -> vector<2x32xf32>
    %34 = arith.addf %32, %33 : vector<2x32xf32>
    %35 = math.tanh %34 : vector<2x32xf32>
    %c6 = arith.constant 6 : index
    %c0_22 = arith.constant 0 : index
    %36 = vector.load %arg14[%c6, %c0_22] : memref<16x32xf32, #tpu.memory_space<vmem>>, vector<2x32xf32>
    tpu.vector_store %arg14[%c6, %c0_22], %35 {strides = array<i32>} : memref<16x32xf32, #tpu.memory_space<vmem>>, vector<2x32xf32>,
    %37 = vector.extract_strided_slice %15 {offsets = [8, 0], sizes = [2, 32], strides = [1, 1]} : vector<16x32xf32> to vector<2x32xf32>
    %cst_23 = arith.constant dense<0.000000e+00> : vector<2x32xf32>
    %38 = tpu.matmul %35, %0, %cst_23 {dimension_numbers = #tpu.dot_dimension_numbers<[1], [0], [0], [1], [0, 0, 1, 1], [], []>} : vector<2x32xf32>, vector<32x32xf32>, vector<2x32xf32> -> vector<2x32xf32>
    %39 = arith.addf %37, %38 : vector<2x32xf32>
    %40 = math.tanh %39 : vector<2x32xf32>
    %c8 = arith.constant 8 : index
    %c0_24 = arith.constant 0 : index
    %41 = vector.load %arg14[%c8, %c0_24] : memref<16x32xf32, #tpu.memory_space<vmem>>, vector<2x32xf32>
    tpu.vector_store %arg14[%c8, %c0_24], %40 {strides = array<i32>} : memref<16x32xf32, #tpu.memory_space<vmem>>, vector<2x32xf32>,
    %42 = vector.extract_strided_slice %15 {offsets = [10, 0], sizes = [2, 32], strides = [1, 1]} : vector<16x32xf32> to vector<2x32xf32>
    %cst_25 = arith.constant dense<0.000000e+00> : vector<2x32xf32>
    %43 = tpu.matmul %40, %0, %cst_25 {dimension_numbers = #tpu.dot_dimension_numbers<[1], [0], [0], [1], [0, 0, 1, 1], [], []>} : vector<2x32xf32>, vector<32x32xf32>, vector<2x32xf32> -> vector<2x32xf32>
    %44 = arith.addf %42, %43 : vector<2x32xf32>
    %45 = math.tanh %44 : vector<2x32xf32>
    %c10 = arith.constant 10 : index
    %c0_26 = arith.constant 0 : index
    %46 = vector.load %arg14[%c10, %c0_26] : memref<16x32xf32, #tpu.memory_space<vmem>>, vector<2x32xf32>
    tpu.vector_store %arg14[%c10, %c0_26], %45 {strides = array<i32>} : memref<16x32xf32, #tpu.memory_space<vmem>>, vector<2x32xf32>,
    %47 = vector.extract_strided_slice %15 {offsets = [12, 0], sizes = [2, 32], strides = [1, 1]} : vector<16x32xf32> to vector<2x32xf32>
    %cst_27 = arith.constant dense<0.000000e+00> : vector<2x32xf32>
    %48 = tpu.matmul %45, %0, %cst_27 {dimension_numbers = #tpu.dot_dimension_numbers<[1], [0], [0], [1], [0, 0, 1, 1], [], []>} : vector<2x32xf32>, vector<32x32xf32>, vector<2x32xf32> -> vector<2x32xf32>
    %49 = arith.addf %47, %48 : vector<2x32xf32>
    %50 = math.tanh %49 : vector<2x32xf32>
    %c12 = arith.constant 12 : index
    %c0_28 = arith.constant 0 : index
    %51 = vector.load %arg14[%c12, %c0_28] : memref<16x32xf32, #tpu.memory_space<vmem>>, vector<2x32xf32>
    tpu.vector_store %arg14[%c12, %c0_28], %50 {strides = array<i32>} : memref<16x32xf32, #tpu.memory_space<vmem>>, vector<2x32xf32>,
    %52 = vector.extract_strided_slice %15 {offsets = [14, 0], sizes = [2, 32], strides = [1, 1]} : vector<16x32xf32> to vector<2x32xf32>
    %cst_29 = arith.constant dense<0.000000e+00> : vector<2x32xf32>
    %53 = tpu.matmul %50, %0, %cst_29 {dimension_numbers = #tpu.dot_dimension_numbers<[1], [0], [0], [1], [0, 0, 1, 1], [], []>} : vector<2x32xf32>, vector<32x32xf32>, vector<2x32xf32> -> vector<2x32xf32>
    %54 = arith.addf %52, %53 : vector<2x32xf32>
    %55 = math.tanh %54 : vector<2x32xf32>
    %c14 = arith.constant 14 : index
    %c0_30 = arith.constant 0 : index
    %56 = vector.load %arg14[%c14, %c0_30] : memref<16x32xf32, #tpu.memory_space<vmem>>, vector<2x32xf32>
    tpu.vector_store %arg14[%c14, %c0_30], %55 {strides = array<i32>} : memref<16x32xf32, #tpu.memory_space<vmem>>, vector<2x32xf32>,
    %c0_31 = arith.constant 0 : index
    %c0_32 = arith.constant 0 : index
    %57 = vector.load %arg14[%c0_31, %c0_32] : memref<16x32xf32, #tpu.memory_space<vmem>>, vector<16x32xf32>
    %cst_33 = arith.constant dense<0.000000e+00> : vector<16x32xf32>
    %58 = tpu.matmul %57, %1, %cst_33 {dimension_numbers = #tpu.dot_dimension_numbers<[1], [0], [0], [1], [0, 0, 1, 1], [], []>} : vector<16x32xf32>, vector<32x32xf32>, vector<16x32xf32> -> vector<16x32xf32>
    %59 = vector.broadcast %2 : vector<1x32xf32> to vector<16x32xf32>
    %60 = arith.addf %58, %59 : vector<16x32xf32>
    %cst_34 = arith.constant 0.000000e+00 : f32
    %61 = vector.broadcast %cst_34 : f32 to vector<2x32xf32>
    %62 = vector.extract_strided_slice %60 {offsets = [0, 0], sizes = [2, 32], strides = [1, 1]} : vector<16x32xf32> to vector<2x32xf32>
    %cst_35 = arith.constant dense<0.000000e+00> : vector<2x32xf32>
    %63 = tpu.matmul %61, %3, %cst_35 {dimension_numbers = #tpu.dot_dimension_numbers<[1], [0], [0], [1], [0, 0, 1, 1], [], []>} : vector<2x32xf32>, vector<32x32xf32>, vector<2x32xf32> -> vector<2x32xf32>
    %64 = arith.addf %62, %63 : vector<2x32xf32>
    %65 = math.tanh %64 : vector<2x32xf32>
    %c0_36 = arith.constant 0 : index
    %c0_37 = arith.constant 0 : index
    %66 = vector.load %arg14[%c0_36, %c0_37] : memref<16x32xf32, #tpu.memory_space<vmem>>, vector<2x32xf32>
    tpu.vector_store %arg14[%c0_36, %c0_37], %65 {strides = array<i32>} : memref<16x32xf32, #tpu.memory_space<vmem>>, vector<2x32xf32>,
    %67 = vector.extract_strided_slice %60 {offsets = [2, 0], sizes = [2, 32], strides = [1, 1]} : vector<16x32xf32> to vector<2x32xf32>
    %cst_38 = arith.constant dense<0.000000e+00> : vector<2x32xf32>
    %68 = tpu.matmul %65, %3, %cst_38 {dimension_numbers = #tpu.dot_dimension_numbers<[1], [0], [0], [1], [0, 0, 1, 1], [], []>} : vector<2x32xf32>, vector<32x32xf32>, vector<2x32xf32> -> vector<2x32xf32>
    %69 = arith.addf %67, %68 : vector<2x32xf32>
    %70 = math.tanh %69 : vector<2x32xf32>
    %c2_39 = arith.constant 2 : index
    %c0_40 = arith.constant 0 : index
    %71 = vector.load %arg14[%c2_39, %c0_40] : memref<16x32xf32, #tpu.memory_space<vmem>>, vector<2x32xf32>
    tpu.vector_store %arg14[%c2_39, %c0_40], %70 {strides = array<i32>} : memref<16x32xf32, #tpu.memory_space<vmem>>, vector<2x32xf32>,
    %72 = vector.extract_strided_slice %60 {offsets = [4, 0], sizes = [2, 32], strides = [1, 1]} : vector<16x32xf32> to vector<2x32xf32>
    %cst_41 = arith.constant dense<0.000000e+00> : vector<2x32xf32>
    %73 = tpu.matmul %70, %3, %cst_41 {dimension_numbers = #tpu.dot_dimension_numbers<[1], [0], [0], [1], [0, 0, 1, 1], [], []>} : vector<2x32xf32>, vector<32x32xf32>, vector<2x32xf32> -> vector<2x32xf32>
    %74 = arith.addf %72, %73 : vector<2x32xf32>
    %75 = math.tanh %74 : vector<2x32xf32>
    %c4_42 = arith.constant 4 : index
    %c0_43 = arith.constant 0 : index
    %76 = vector.load %arg14[%c4_42, %c0_43] : memref<16x32xf32, #tpu.memory_space<vmem>>, vector<2x32xf32>
    tpu.vector_store %arg14[%c4_42, %c0_43], %75 {strides = array<i32>} : memref<16x32xf32, #tpu.memory_space<vmem>>, vector<2x32xf32>,
    %77 = vector.extract_strided_slice %60 {offsets = [6, 0], sizes = [2, 32], strides = [1, 1]} : vector<16x32xf32> to vector<2x32xf32>
    %cst_44 = arith.constant dense<0.000000e+00> : vector<2x32xf32>
    %78 = tpu.matmul %75, %3, %cst_44 {dimension_numbers = #tpu.dot_dimension_numbers<[1], [0], [0], [1], [0, 0, 1, 1], [], []>} : vector<2x32xf32>, vector<32x32xf32>, vector<2x32xf32> -> vector<2x32xf32>
    %79 = arith.addf %77, %78 : vector<2x32xf32>
    %80 = math.tanh %79 : vector<2x32xf32>
    %c6_45 = arith.constant 6 : index
    %c0_46 = arith.constant 0 : index
    %81 = vector.load %arg14[%c6_45, %c0_46] : memref<16x32xf32, #tpu.memory_space<vmem>>, vector<2x32xf32>
    tpu.vector_store %arg14[%c6_45, %c0_46], %80 {strides = array<i32>} : memref<16x32xf32, #tpu.memory_space<vmem>>, vector<2x32xf32>,
    %82 = vector.extract_strided_slice %60 {offsets = [8, 0], sizes = [2, 32], strides = [1, 1]} : vector<16x32xf32> to vector<2x32xf32>
    %cst_47 = arith.constant dense<0.000000e+00> : vector<2x32xf32>
    %83 = tpu.matmul %80, %3, %cst_47 {dimension_numbers = #tpu.dot_dimension_numbers<[1], [0], [0], [1], [0, 0, 1, 1], [], []>} : vector<2x32xf32>, vector<32x32xf32>, vector<2x32xf32> -> vector<2x32xf32>
    %84 = arith.addf %82, %83 : vector<2x32xf32>
    %85 = math.tanh %84 : vector<2x32xf32>
    %c8_48 = arith.constant 8 : index
    %c0_49 = arith.constant 0 : index
    %86 = vector.load %arg14[%c8_48, %c0_49] : memref<16x32xf32, #tpu.memory_space<vmem>>, vector<2x32xf32>
    tpu.vector_store %arg14[%c8_48, %c0_49], %85 {strides = array<i32>} : memref<16x32xf32, #tpu.memory_space<vmem>>, vector<2x32xf32>,
    %87 = vector.extract_strided_slice %60 {offsets = [10, 0], sizes = [2, 32], strides = [1, 1]} : vector<16x32xf32> to vector<2x32xf32>
    %cst_50 = arith.constant dense<0.000000e+00> : vector<2x32xf32>
    %88 = tpu.matmul %85, %3, %cst_50 {dimension_numbers = #tpu.dot_dimension_numbers<[1], [0], [0], [1], [0, 0, 1, 1], [], []>} : vector<2x32xf32>, vector<32x32xf32>, vector<2x32xf32> -> vector<2x32xf32>
    %89 = arith.addf %87, %88 : vector<2x32xf32>
    %90 = math.tanh %89 : vector<2x32xf32>
    %c10_51 = arith.constant 10 : index
    %c0_52 = arith.constant 0 : index
    %91 = vector.load %arg14[%c10_51, %c0_52] : memref<16x32xf32, #tpu.memory_space<vmem>>, vector<2x32xf32>
    tpu.vector_store %arg14[%c10_51, %c0_52], %90 {strides = array<i32>} : memref<16x32xf32, #tpu.memory_space<vmem>>, vector<2x32xf32>,
    %92 = vector.extract_strided_slice %60 {offsets = [12, 0], sizes = [2, 32], strides = [1, 1]} : vector<16x32xf32> to vector<2x32xf32>
    %cst_53 = arith.constant dense<0.000000e+00> : vector<2x32xf32>
    %93 = tpu.matmul %90, %3, %cst_53 {dimension_numbers = #tpu.dot_dimension_numbers<[1], [0], [0], [1], [0, 0, 1, 1], [], []>} : vector<2x32xf32>, vector<32x32xf32>, vector<2x32xf32> -> vector<2x32xf32>
    %94 = arith.addf %92, %93 : vector<2x32xf32>
    %95 = math.tanh %94 : vector<2x32xf32>
    %c12_54 = arith.constant 12 : index
    %c0_55 = arith.constant 0 : index
    %96 = vector.load %arg14[%c12_54, %c0_55] : memref<16x32xf32, #tpu.memory_space<vmem>>, vector<2x32xf32>
    tpu.vector_store %arg14[%c12_54, %c0_55], %95 {strides = array<i32>} : memref<16x32xf32, #tpu.memory_space<vmem>>, vector<2x32xf32>,
    %97 = vector.extract_strided_slice %60 {offsets = [14, 0], sizes = [2, 32], strides = [1, 1]} : vector<16x32xf32> to vector<2x32xf32>
    %cst_56 = arith.constant dense<0.000000e+00> : vector<2x32xf32>
    %98 = tpu.matmul %95, %3, %cst_56 {dimension_numbers = #tpu.dot_dimension_numbers<[1], [0], [0], [1], [0, 0, 1, 1], [], []>} : vector<2x32xf32>, vector<32x32xf32>, vector<2x32xf32> -> vector<2x32xf32>
    %99 = arith.addf %97, %98 : vector<2x32xf32>
    %100 = math.tanh %99 : vector<2x32xf32>
    %c14_57 = arith.constant 14 : index
    %c0_58 = arith.constant 0 : index
    %101 = vector.load %arg14[%c14_57, %c0_58] : memref<16x32xf32, #tpu.memory_space<vmem>>, vector<2x32xf32>
    tpu.vector_store %arg14[%c14_57, %c0_58], %100 {strides = array<i32>} : memref<16x32xf32, #tpu.memory_space<vmem>>, vector<2x32xf32>,
    %c0_59 = arith.constant 0 : index
    %c0_60 = arith.constant 0 : index
    %102 = vector.load %arg14[%c0_59, %c0_60] : memref<16x32xf32, #tpu.memory_space<vmem>>, vector<16x32xf32>
    %c0_61 = arith.constant 0 : index
    %c0_62 = arith.constant 0 : index
    %103 = vector.load %arg7[%c0_61, %c0_62] : memref<32x2xf32, #tpu.memory_space<vmem>>, vector<32x2xf32>
    %cst_63 = arith.constant dense<0.000000e+00> : vector<16x2xf32>
    %104 = tpu.matmul %102, %103, %cst_63 {dimension_numbers = #tpu.dot_dimension_numbers<[1], [0], [0], [1], [0, 0, 1, 1], [], []>} : vector<16x32xf32>, vector<32x2xf32>, vector<16x2xf32> -> vector<16x2xf32>
    %c0_64 = arith.constant 0 : index
    %c0_65 = arith.constant 0 : index
    %105 = vector.load %arg8[%c0_64, %c0_65] : memref<1x2xf32, #tpu.memory_space<vmem>>, vector<1x2xf32>
    %106 = vector.broadcast %105 : vector<1x2xf32> to vector<16x2xf32>
    %107 = arith.addf %104, %106 : vector<16x2xf32>
    %108 = vector.extract_strided_slice %107 {offsets = [0, 0], sizes = [16, 1], strides = [1, 1]} : vector<16x2xf32> to vector<16x1xf32>
    %c0_66 = arith.constant 0 : index
    %c0_67 = arith.constant 0 : index
    %109 = vector.load %arg9[%c0_66, %c0_67] : memref<16x2xf32, #tpu.memory_space<vmem>>, vector<16x2xf32>
    %110 = vector.broadcast %108 : vector<16x1xf32> to vector<16x2xf32>
    %111 = arith.mulf %110, %109 : vector<16x2xf32>
    %112 = vector.extract_strided_slice %107 {offsets = [0, 1], sizes = [16, 1], strides = [1, 1]} : vector<16x2xf32> to vector<16x1xf32>
    %c0_68 = arith.constant 0 : index
    %c0_69 = arith.constant 0 : index
    %113 = vector.load %arg10[%c0_68, %c0_69] : memref<16x2xf32, #tpu.memory_space<vmem>>, vector<16x2xf32>
    %114 = vector.broadcast %112 : vector<16x1xf32> to vector<16x2xf32>
    %115 = arith.mulf %114, %113 : vector<16x2xf32>
    %116 = arith.addf %111, %115 : vector<16x2xf32>
    %c0_70 = arith.constant 0 : index
    %c0_71 = arith.constant 0 : index
    %117 = vector.load %arg11[%c0_70, %c0_71] : memref<2x16xf32, #tpu.memory_space<vmem>>, vector<2x16xf32>
    %cst_72 = arith.constant dense<0.000000e+00> : vector<2x2xf32>
    %118 = tpu.matmul %117, %116, %cst_72 {dimension_numbers = #tpu.dot_dimension_numbers<[1], [0], [0], [1], [0, 0, 1, 1], [], []>} : vector<2x16xf32>, vector<16x2xf32>, vector<2x2xf32> -> vector<2x2xf32>
    %c0_73 = arith.constant 0 : index
    %c0_74 = arith.constant 0 : index
    %119 = vector.load %arg12[%c0_73, %c0_74] : memref<1x2xf32, #tpu.memory_space<vmem>>, vector<1x2xf32>
    %120 = vector.broadcast %119 : vector<1x2xf32> to vector<2x2xf32>
    %121 = arith.addf %118, %120 : vector<2x2xf32>
    %cst_75 = arith.constant dense<0xFF800000> : vector<2xf32>
    %122 = vector.multi_reduction <maximumf>, %121, %cst_75 [1] : vector<2x2xf32> to vector<2xf32>
    %123 = vector.shape_cast %122 : vector<2xf32> to vector<2x1xf32>
    %124 = vector.broadcast %123 : vector<2x1xf32> to vector<2x2xf32>
    %125 = arith.subf %121, %124 : vector<2x2xf32>
    %126 = math.exp %125 : vector<2x2xf32>
    %cst_76 = arith.constant dense<0.000000e+00> : vector<2xf32>
    %127 = vector.multi_reduction <add>, %126, %cst_76 [1] : vector<2x2xf32> to vector<2xf32>
    %128 = vector.shape_cast %127 : vector<2xf32> to vector<2x1xf32>
    %129 = vector.broadcast %128 : vector<2x1xf32> to vector<2x2xf32>
    %130 = arith.divf %126, %129 : vector<2x2xf32>
    %c0_77 = arith.constant 0 : index
    %c0_78 = arith.constant 0 : index
    %131 = vector.load %arg13[%c0_77, %c0_78] : memref<2x2xf32, #tpu.memory_space<vmem>>, vector<2x2xf32>
    tpu.vector_store %arg13[%c0_77, %c0_78], %130 {strides = array<i32>} : memref<2x2xf32, #tpu.memory_space<vmem>>, vector<2x2xf32>,
    return
  }
}

</mosaic_0001>

<bundles_post_ra>
// kernel: rnn_imdb_forward.1
= control target key start
LH: loop header
LB: loop body
LE: loop exit
PB: predicated region body
PF: predicated region fallthrough
CT: control target
= control target key end

     0   :  { %vm92_vm0 = vcmask 1042432   ;;  %v855_v2 = vmov 0   ;;  %s1163_s0 = inlined_call_operand.vmem [shape: s32[16,1], index: 0, kind: input, shape index: {}]   ;;  %s1164_s1 = inlined_call_operand.vmem [shape: f32[51,32], index: 1, kind: input, shape index: {}]   ;;  %s1165_s2 = inlined_call_operand.vmem [shape: f32[1,32], index: 2, kind: input, shape index: {}]   ;;  %s1166_s3 = inlined_call_operand.vmem [shape: f32[32,32], index: 3, kind: input, shape index: {}]   ;;  %s1167_s4 = inlined_call_operand.vmem [shape: f32[32,32], index: 4, kind: input, shape index: {}]   ;;  %s1168_s5 = inlined_call_operand.vmem [shape: f32[1,32], index: 5, kind: input, shape index: {}]   ;;  %s1169_s6 = inlined_call_operand.vmem [shape: f32[32,32], index: 6, kind: input, shape index: {}]   ;;  %s1170_s7 = inlined_call_operand.vmem [shape: f32[32,2], index: 7, kind: input, shape index: {}]   ;;  %s1171_s8 = inlined_call_operand.vmem [shape: f32[1,2], index: 8, kind: input, shape index: {}]   ;;  %s1172_s9 = inlined_call_operand.vmem [shape: f32[16,2], index: 9, kind: input, shape index: {}]   ;;  %s1173_s10 = inlined_call_operand.vmem [shape: f32[16,2], index: 10, kind: input, shape index: {}]   ;;  %s1174_s11 = inlined_call_operand.vmem [shape: f32[2,16], index: 11, kind: input, shape index: {}]   ;;  %s1175_s12 = inlined_call_operand.vmem [shape: f32[1,2], index: 12, kind: input, shape index: {}]   ;;  %s1176_s13 = inlined_call_operand.hbm [shape: f32[2,2], index: 13, kind: output, shape index: {}]  }
   0x1   :  { %v58_v0 = vld [vmem:[%s1163_s0] sm:$0xff]  ;;  %v80_v1 = vld [vmem:[%s1164_s1 + $0x30] sm:$0x7]  ;;  %783 = vset.pattern.permute.xlu0 %v855_v2  ;;  %v79_v3 = vld [vmem:[%s1164_s1 + $0x28] sm:$0xff] }
   0x2   :  { %757 = vmatpush.msk.msra.mxu0 %vm92_vm0, %v80_v1  ;;  %v941_v4 = vld [vmem:[%s1166_s3 + $0x18] sm:$0xff]  ;;  %61 = vperm.xlu0 %783, %v58_v0   ;;  %v78_v5 = vld [vmem:[%s1164_s1 + $0x20] sm:$0xff]  ;;  %v950_v6 = vld [vmem:[%s1166_s3 + $0x10] sm:$0xff] }
   0x3   :  { %135 = vmatpush.msra.mxu3 %v941_v4  ;;  %v77_v7 = vld [vmem:[%s1164_s1 + $0x18] sm:$0xff]  ;;  %v958_v8 = vld [vmem:[%s1166_s3 + $0x8] sm:$0xff]  ;;  %162 = vmatpush.msra.mxu2 %v941_v4  ;;  %v966_v9 = vld [vmem:[%s1166_s3] sm:$0xff] }
   0x4   :  { %106 = vmatpush.msra.mxu0 %v79_v3  ;;  %224 = vmatpush.msra.mxu1 %v941_v4 }
   0x5   :  { %136 = vmatpush.msra.mxu3 %v950_v6  ;;  %163 = vmatpush.msra.mxu2 %v950_v6 }
   0x6   :  { %107 = vmatpush.msra.mxu0 %v78_v5 }
   0x7   :  { %18 = vsyncpa [#allocation4], 0  ;;  %137 = vmatpush.msra.mxu3 %v958_v8  ;;  %v76_v10 = vld [vmem:[%s1164_s1 + $0x10] sm:$0xff]  ;;  %225 = vmatpush.msra.mxu1 %v950_v6  ;;  %v59_v11 = vld [vmem:[%s1163_s0 + $0x8] sm:$0xff]  ;;  %v856_v13 = vmov 0.0   ;;  %v66_v15 = vlaneseq  ;;  %vm85_vm1 = vcmask 416768  }
   0x8   :  { %108 = vmatpush.msra.mxu0 %v77_v7  ;;  %164 = vmatpush.msra.mxu2 %v958_v8  ;;  %v75_v12 = vld [vmem:[%s1164_s1 + $0x8] sm:$0xff]  ;;  %v74_v14 = vld [vmem:[%s1164_s1] sm:$0xff]  ;;  %vm145_vm4 = vcmask 254976   ;;  %vm119_vm5 = vcmask 261120   ;;  %vm175_vm6 = vcmask 257026   ;;  %vm206_vm7 = vcmask 259076  }
   0x9   :  { %138 = vmatpush.msra.mxu3 %v966_v9  ;;  %226 = vmatpush.msra.mxu1 %v958_v8  ;;  %v67_v16 = vand.u32 127, %v66_v15  ;;  %v1010_v21 = vld [vmem:[%s1165_s2] ss:$0 sm:$0xff]  ;;  %vm237_vm8 = vcmask 261126   ;;  %v52_v42 = vld [vmem:[%s1167_s4 + $0x18] sm:$0xff]  ;;  %v51_v43 = vld [vmem:[%s1167_s4 + $0x10] sm:$0xff] }
   0xa   :  { %109 = vmatpush.msra.mxu0 %v76_v10  ;;  %139 = vmatmul.f32.vlgmr.msra.gmra.mxu3 %v856_v13  ;;  %v1034_v44 = vld [vmem:[%s1169_s6 + $0x18] sm:$0xff]  ;;  %v50_v45 = vld [vmem:[%s1167_s4 + $0x8] sm:$0xff]  ;;  %v49_v46 = vld [vmem:[%s1167_s4] sm:$0xff]  ;;  %vm689_vm9 = vcmask 130048   ;;  %vm713_vm10 = vcmask 9216   ;;  %s746_s29 = sshll.u32 %s1176_s13, 4  ;;  %s747_s29 = int_to_ptr.hbm [resolvable:$true] %s746_s29 }
   0xb   :  { %64 = vperm.xlu0 %783, %v59_v11   ;;  %165 = vmatpush.msra.mxu2 %v966_v9  ;;  %v1048_v47 = vld [vmem:[%s1169_s6 + $0x10] sm:$0xff]  ;;  %v1053_v48 = vld [vmem:[%s1169_s6 + $0x8] sm:$0xff]  ;;  %v1060_v49 = vld [vmem:[%s1169_s6] sm:$0xff] }
   0xc   :  { %110 = vmatpush.msra.mxu0 %v75_v12  ;;  %193 = vmatpush.msrb.mxu3 %v941_v4  ;;  %v1089_v59 = vld [vmem:[%s1168_s5] ss:$0 sm:$0xff] }
   0xd   :  { %227 = vmatpush.msra.mxu1 %v966_v9  ;;  %255 = vmatpush.msrb.mxu2 %v941_v4 }
   0xe   :  { %194 = vmatpush.msrb.mxu3 %v950_v6  ;;  %786 = vset.pattern.permute.xlu2 %v855_v2 }
   0xf   :  { %311 = vmatpush.msrb.mxu1 %v941_v4  ;;  %256 = vmatpush.msrb.mxu2 %v950_v6 }
  0x10   :  { %195 = vmatpush.msrb.mxu3 %v958_v8  ;;  %784 = vset.pattern.permute.xlu1 %v855_v2 }
  0x11   :  { %312 = vmatpush.msrb.mxu1 %v950_v6  ;;  %257 = vmatpush.msrb.mxu2 %v958_v8 }
  0x12   :  { %196 = vmatpush.msrb.mxu3 %v966_v9  ;;  %111 = vmatpush.msra.mxu0 %v74_v14 }
  0x13   :  { %313 = vmatpush.msrb.mxu1 %v958_v8  ;;  %258 = vmatpush.msrb.mxu2 %v966_v9 }
  0x14   :  { %281 = vmatpush.msra.mxu3 %v941_v4  ;;  %401 = vmatpush.msrb.mxu0 %v1034_v44 }
  0x15   :  { %314 = vmatpush.msrb.mxu1 %v966_v9 }
  0x16   :  { %282 = vmatpush.msra.mxu3 %v950_v6  ;;  %402 = vmatpush.msrb.mxu0 %v1048_v47 }
  0x18   :  { %283 = vmatpush.msra.mxu3 %v958_v8  ;;  %403 = vmatpush.msrb.mxu0 %v1053_v48 }
  0x1a   :  { %284 = vmatpush.msra.mxu3 %v966_v9  ;;  %404 = vmatpush.msrb.mxu0 %v1060_v49 }
  0x74   :  { %v62_v17 = vpop.permute.xlu0 %61 }
  0x75   :  { %vm68_vm2 = vcmp.eq.s32.totalorder %v62_v17, %v67_v16 }
  0x76   :  { %v755_v18 = vsel %vm68_vm2, 1.0, %v856_v13 }
  0x77   :  { %758 = vmatmul.msk.f32.vlgmr.msra.gmra.mxu0 %vm85_vm1, %v755_v18 }
  0x78   :  { %487 = vmatpush.msra.mxu0 %v1034_v44 }
  0x7a   :  { %488 = vmatpush.msra.mxu0 %v1048_v47 }
  0x7c   :  { %489 = vmatpush.msra.mxu0 %v1053_v48 }
  0x7d   :  { %v65_v19 = vpop.permute.xlu0 %64 }
  0x7e   :  { %vm69_vm3 = vcmp.eq.s32.totalorder %v65_v19, %v67_v16  ;;  %490 = vmatpush.msra.mxu0 %v1060_v49 }
  0x7f   :  { %v756_v20 = vsel %vm69_vm3, 1.0, %v856_v13 }
  0x80   :  { %759 = vmatmul.msk.f32.gmra.mxu0 %vm85_vm1, %v756_v20 }
  0x88   :  { %405 = vmatmul.f32.vlgmr.msrb.gmra.mxu0 %v856_v13 }
  0x89   :  { %603 = vmatpush.msrb.mxu0 %v1034_v44 }
  0x8b   :  { %604 = vmatpush.msrb.mxu0 %v1048_v47 }
  0x8d   :  { %v140_v23 = vpop.f32.mrf.mxu3  ;;  %605 = vmatpush.msrb.mxu0 %v1053_v48 }
  0x8f   :  { %606 = vmatpush.msrb.mxu0 %v1060_v49 }
  0xf4   :  { %v113_v22 = vpop.f32.mrf.mxu0 }
  0xf5   :  { %v114_v24 = vadd.f32 %v1010_v21, %v113_v22 }
  0xf7   :  { %v143_v25 = vadd.f32 %v140_v23, %v114_v24  ;;  %v622_v23 = vld [vmem:[%s1170_s7 + $0x18] sm:$0xff] }
  0xf9   :  { %793 = vtanh.f32 %v143_v25  ;;  %v620_v25 = vld [vmem:[%s1170_s7 + $0x8] sm:$0xff] }
  0xfd   :  { %v116_v50 = vpop.f32.mrf.mxu0 }
  0xfe   :  { %v117_v51 = vadd.f32 %v1010_v21, %v116_v50 }
  0xff   :  { %v794_v26 = vpop.eup %793 }
 0x100   :  { %146 = vst.msk [vmem:[#allocation2] sm:$0x3] %vm145_vm4, %v794_v26  ;;  %760 = vmatmul.msk.f32.vlgmr.msra.gmra.mxu2 %vm119_vm5, %v794_v26  ;;  %v619_v26 = vld [vmem:[%s1170_s7] sm:$0xff] }
 0x101   :  { %341 = vmatpush.msra.mxu2 %v941_v4 }
 0x103   :  { %342 = vmatpush.msra.mxu2 %v950_v6 }
 0x105   :  { %343 = vmatpush.msra.mxu2 %v958_v8  ;;  %v406_v61 = vpop.f32.mrf.mxu0 }
 0x107   :  { %344 = vmatpush.msra.mxu2 %v966_v9 }
 0x183   :  { %v167_v27 = vpop.f32.mrf.mxu2 }
 0x184   :  { %v171_v28 = vrot.slane %v167_v27, 6 }
 0x186   :  { %v173_v29 = vadd.f32 %v171_v28, %v114_v24 }
 0x188   :  { %795 = vtanh.f32 %v173_v29 }
 0x18e   :  { %v796_v30 = vpop.eup %795 }
 0x18f   :  { %176 = vst.msk [vmem:[#allocation2] sm:$0xc] %vm175_vm6, %v796_v30  ;;  %v178_v31 = vrot.slane %v796_v30, 2 }
 0x191   :  { %761 = vmatmul.msk.f32.vlgmr.msrb.gmra.mxu3 %vm119_vm5, %v178_v31 }
 0x192   :  { %378 = vmatpush.msrb.mxu3 %v52_v42 }
 0x194   :  { %379 = vmatpush.msrb.mxu3 %v51_v43 }
 0x196   :  { %380 = vmatpush.msrb.mxu3 %v50_v45 }
 0x198   :  { %381 = vmatpush.msrb.mxu3 %v49_v46 }
 0x214   :  { %v198_v32 = vpop.f32.mrf.mxu3 }
 0x215   :  { %v202_v33 = vrot.slane %v198_v32, 4 }
 0x217   :  { %v204_v34 = vadd.f32 %v202_v33, %v114_v24  ;;  %v857_v33 = vmov 1  }
 0x218   :  { %788 = vset.pattern.permute.xlu0 %v857_v33 }
 0x219   :  { %797 = vtanh.f32 %v204_v34 }
 0x21f   :  { %v798_v35 = vpop.eup %797 }
 0x220   :  { %207 = vst.msk [vmem:[#allocation2] sm:$0x30] %vm206_vm7, %v798_v35  ;;  %v209_v36 = vrot.slane %v798_v35, 4 }
 0x222   :  { %762 = vmatmul.msk.f32.vlgmr.msra.gmra.mxu1 %vm119_vm5, %v209_v36 }
 0x223   :  { %427 = vmatpush.msra.mxu1 %v1034_v44 }
 0x225   :  { %428 = vmatpush.msra.mxu1 %v1048_v47 }
 0x227   :  { %429 = vmatpush.msra.mxu1 %v1053_v48 }
 0x229   :  { %430 = vmatpush.msra.mxu1 %v1060_v49 }
 0x29f   :  { %v229_v37 = vpop.f32.mrf.mxu1 }
 0x2a0   :  { %v233_v38 = vrot.slane %v229_v37, 2 }
 0x2a2   :  { %v235_v39 = vadd.f32 %v233_v38, %v114_v24  ;;  %v621_v24 = vld [vmem:[%s1170_s7 + $0x10] sm:$0xff]  ;;  %v791_v38 = vld [vmem:[%s1171_s8] ss:$0 sm:$0xff] }
 0x2a4   :  { %799 = vtanh.f32 %v235_v39 }
 0x2aa   :  { %v800_v40 = vpop.eup %799 }
 0x2ab   :  { %238 = vst.msk [vmem:[#allocation2] sm:$0xc0] %vm237_vm8, %v800_v40  ;;  %v240_v41 = vrot.slane %v800_v40, 6 }
 0x2ad   :  { %763 = vmatmul.msk.f32.vlgmr.msrb.gmra.mxu2 %vm119_vm5, %v240_v41 }
 0x2ae   :  { %457 = vmatpush.msrb.mxu2 %v1034_v44 }
 0x2b0   :  { %458 = vmatpush.msrb.mxu2 %v1048_v47 }
 0x2b2   :  { %459 = vmatpush.msrb.mxu2 %v1053_v48  ;;  %v355_v55 = vld [vmem:[#allocation2] sm:$0xff] }
 0x2b4   :  { %460 = vmatpush.msrb.mxu2 %v1060_v49 }
 0x330   :  { %v260_v52 = vpop.f32.mrf.mxu2 }
 0x331   :  { %v263_v53 = vadd.f32 %v260_v52, %v117_v51 }
 0x333   :  { %801 = vtanh.f32 %v263_v53 }
 0x339   :  { %v802_v54 = vpop.eup %801 }
 0x33a   :  { %265 = vst.msk [vmem:[#allocation2 + $0x8] sm:$0x3] %vm145_vm4, %v802_v54  ;;  %764 = vmatmul.msk.f32.vlgmr.msra.gmra.mxu3 %vm119_vm5, %v802_v54 }
 0x33b   :  { %573 = vmatpush.msra.mxu3 %v1034_v44 }
 0x33d   :  { %574 = vmatpush.msra.mxu3 %v1048_v47 }
 0x33f   :  { %575 = vmatpush.msra.mxu3 %v1053_v48 }
 0x341   :  { %576 = vmatpush.msra.mxu3 %v1060_v49 }
 0x342   :  { %767 = vmatmul.msk.f32.vlgmr.msrb.gmra.mxu3 %vm119_vm5, %v355_v55 }
 0x3bd   :  { %v286_v56 = vpop.f32.mrf.mxu3 }
 0x3be   :  { %v290_v57 = vrot.slane %v286_v56, 6 }
 0x3c0   :  { %v292_v58 = vadd.f32 %v290_v57, %v117_v51 }
 0x3c2   :  { %803 = vtanh.f32 %v292_v58 }
 0x3c5   :  { %v383_v60 = vpop.f32.mrf.mxu3 }
 0x3c6   :  { %v384_v62 = vadd.f32 %v1089_v59, %v383_v60 }
 0x3c8   :  { %v804_v63 = vpop.eup %803  ;;  %v409_v0 = vadd.f32 %v406_v61, %v384_v62  ;;  %v670_v61 = vld [vmem:[%s1173_s10] sm:$0xff] }
 0x3c9   :  { %294 = vst.msk [vmem:[#allocation2 + $0x8] sm:$0xc] %vm175_vm6, %v804_v63  ;;  %v296_v1 = vrot.slane %v804_v63, 2  ;;  %v657_v63 = vld [vmem:[%s1172_s9 + $0x8] sm:$0xff] }
 0x3ca   :  { %805 = vtanh.f32 %v409_v0  ;;  %v671_v0 = vld [vmem:[%s1173_s10 + $0x8] sm:$0xff] }
 0x3cb   :  { %765 = vmatmul.msk.f32.vlgmr.msrb.gmra.mxu1 %vm119_vm5, %v296_v1  ;;  %v656_v1 = vld [vmem:[%s1172_s9] sm:$0xff]  ;;  %s858_s9 = smov [#allocation3]  }
 0x3cc   :  { %517 = vmatpush.msrb.mxu1 %v1034_v44 }
 0x3ce   :  { %518 = vmatpush.msrb.mxu1 %v1048_v47 }
 0x3d0   :  { %v806_v2 = vpop.eup %805  ;;  %519 = vmatpush.msrb.mxu1 %v1053_v48 }
 0x3d1   :  { %411 = vst.msk [vmem:[#allocation2] sm:$0x3] %vm145_vm4, %v806_v2 }
 0x3d2   :  { %520 = vmatpush.msrb.mxu1 %v1060_v49 }
 0x3d3   :  { %769 = vmatmul.msk.f32.vlgmr.msra.gmra.mxu1 %vm119_vm5, %v806_v2 }
 0x3d4   :  { %645 = vmatpush.msra.mxu1 %v622_v23 }
 0x3d6   :  { %646 = vmatpush.msra.mxu1 %v621_v24 }
 0x3d8   :  { %647 = vmatpush.msra.mxu1 %v620_v25 }
 0x3da   :  { %648 = vmatpush.msra.mxu1 %v619_v26 }
 0x448   :  { %v316_v3 = vpop.f32.mrf.mxu1 }
 0x449   :  { %v320_v4 = vrot.slane %v316_v3, 4 }
 0x44b   :  { %v322_v5 = vadd.f32 %v320_v4, %v117_v51 }
 0x44d   :  { %807 = vtanh.f32 %v322_v5 }
 0x450   :  { %v432_v6 = vpop.f32.mrf.mxu1 }
 0x451   :  { %v436_v7 = vrot.slane %v432_v6, 6 }
 0x453   :  { %v808_v8 = vpop.eup %807  ;;  %v438_v9 = vadd.f32 %v436_v7, %v384_v62 }
 0x454   :  { %324 = vst.msk [vmem:[#allocation2 + $0x8] sm:$0x30] %vm206_vm7, %v808_v8  ;;  %v326_v10 = vrot.slane %v808_v8, 4 }
 0x455   :  { %809 = vtanh.f32 %v438_v9  ;;  %v684_v9 = vld [vmem:[%s1174_s11] sm:$0x3]  ;;  %s744_s11 = sshll.u32 %s858_s9, 4  ;;  %s745_s11 = int_to_ptr.vmem [resolvable:$true] %s744_s11 }
 0x456   :  { %766 = vmatmul.msk.f32.vlgmr.msra.gmra.mxu2 %vm119_vm5, %v326_v10  ;;  %v792_v10 = vld [vmem:[%s1175_s12] ss:$0 sm:$0xff] }
 0x457   :  { %543 = vmatpush.msra.mxu2 %v1034_v44 }
 0x459   :  { %544 = vmatpush.msra.mxu2 %v1048_v47 }
 0x45b   :  { %v810_v11 = vpop.eup %809  ;;  %545 = vmatpush.msra.mxu2 %v1053_v48 }
 0x45c   :  { %440 = vst.msk [vmem:[#allocation2] sm:$0xc] %vm175_vm6, %v810_v11  ;;  %v442_v12 = vrot.slane %v810_v11, 2 }
 0x45d   :  { %546 = vmatpush.msra.mxu2 %v1060_v49 }
 0x45e   :  { %770 = vmatmul.msk.f32.vlgmr.msrb.gmra.mxu2 %vm119_vm5, %v442_v12 }
 0x4d9   :  { %v346_v13 = vpop.f32.mrf.mxu2 }
 0x4da   :  { %v350_v14 = vrot.slane %v346_v13, 2 }
 0x4dc   :  { %v352_v15 = vadd.f32 %v350_v14, %v117_v51 }
 0x4de   :  { %811 = vtanh.f32 %v352_v15 }
 0x4e1   :  { %v462_v16 = vpop.f32.mrf.mxu2 }
 0x4e2   :  { %v466_v17 = vrot.slane %v462_v16, 4 }
 0x4e4   :  { %v812_v18 = vpop.eup %811  ;;  %v468_v19 = vadd.f32 %v466_v17, %v384_v62 }
 0x4e5   :  { %354 = vst.msk [vmem:[#allocation2 + $0x8] sm:$0xc0] %vm237_vm8, %v812_v18 }
 0x4e6   :  { %813 = vtanh.f32 %v468_v19 }
 0x4ec   :  { %v814_v20 = vpop.eup %813  ;;  %v356_v21 = vld [vmem:[#allocation2 + $0x8] sm:$0xff] }
 0x4ed   :  { %470 = vst.msk [vmem:[#allocation2] sm:$0x30] %vm206_vm7, %v814_v20  ;;  %v472_v22 = vrot.slane %v814_v20, 4  ;;  %768 = vmatmul.msk.f32.gmra.mxu3 %vm119_vm5, %v356_v21 }
 0x4ef   :  { %771 = vmatmul.msk.f32.vlgmr.msra.gmra.mxu0 %vm119_vm5, %v472_v22 }
 0x56c   :  { %v492_v27 = vpop.f32.mrf.mxu0 }
 0x56d   :  { %v496_v28 = vrot.slane %v492_v27, 2 }
 0x56f   :  { %v498_v29 = vadd.f32 %v496_v28, %v384_v62 }
 0x570   :  { %v386_v34 = vpop.f32.mrf.mxu3 }
 0x571   :  { %815 = vtanh.f32 %v498_v29  ;;  %v387_v35 = vadd.f32 %v1089_v59, %v386_v34 }
 0x577   :  { %v816_v30 = vpop.eup %815 }
 0x578   :  { %500 = vst.msk [vmem:[#allocation2] sm:$0xc0] %vm237_vm8, %v816_v30  ;;  %v502_v31 = vrot.slane %v816_v30, 6 }
 0x57a   :  { %772 = vmatmul.msk.f32.vlgmr.msrb.gmra.mxu1 %vm119_vm5, %v502_v31 }
 0x57f   :  { %v617_v32 = vld [vmem:[#allocation2] sm:$0xff] }
 0x582   :  { %776 = vmatmul.msk.f32.vlgmr.msra.gmra.mxu1 %vm119_vm5, %v617_v32 }
 0x5f7   :  { %v522_v36 = vpop.f32.mrf.mxu1 }
 0x5f8   :  { %v525_v37 = vadd.f32 %v522_v36, %v387_v35 }
 0x5fa   :  { %817 = vtanh.f32 %v525_v37 }
 0x5ff   :  { %v650_v39 = vpop.f32.mrf.mxu1 }
 0x600   :  { %v818_v40 = vpop.eup %817  ;;  %v651_v41 = vadd.f32 %v791_v38, %v650_v39 }
 0x601   :  { %527 = vst.msk [vmem:[#allocation2 + $0x8] sm:$0x3] %vm145_vm4, %v818_v40  ;;  %773 = vmatmul.msk.f32.vlgmr.msra.gmra.mxu2 %vm119_vm5, %v818_v40 }
 0x602   :  { %660 = vperm.xlu2 %786, %v651_v41  }
 0x60a   :  { %787 = vset.pattern.permute.xlu2 %v857_v33 }
 0x60b   :  { %673 = vperm.xlu2 %787, %v651_v41  }
 0x65c   :  { %v661_v59 = vpop.permute.xlu2 %660 }
 0x65d   :  { %v668_v6 = vmul.f32 %v661_v59, %v656_v1 }
 0x665   :  { %v674_v62 = vpop.permute.xlu2 %673 }
 0x666   :  { %v680_v3 = vmul.f32 %v674_v62, %v670_v61 }
 0x668   :  { %v682_v8 = vadd.f32 %v680_v3, %v668_v6 }
 0x684   :  { %v548_v42 = vpop.f32.mrf.mxu2 }
 0x685   :  { %v552_v43 = vrot.slane %v548_v42, 6 }
 0x687   :  { %v554_v44 = vadd.f32 %v552_v43, %v387_v35 }
 0x689   :  { %819 = vtanh.f32 %v554_v44 }
 0x68f   :  { %v820_v45 = vpop.eup %819 }
 0x690   :  { %556 = vst.msk [vmem:[#allocation2 + $0x8] sm:$0xc] %vm175_vm6, %v820_v45  ;;  %v558_v46 = vrot.slane %v820_v45, 2 }
 0x692   :  { %774 = vmatmul.msk.f32.vlgmr.msra.gmra.mxu3 %vm119_vm5, %v558_v46 }
 0x715   :  { %v578_v47 = vpop.f32.mrf.mxu3 }
 0x716   :  { %v582_v48 = vrot.slane %v578_v47, 4 }
 0x718   :  { %v584_v49 = vadd.f32 %v582_v48, %v387_v35 }
 0x71a   :  { %821 = vtanh.f32 %v584_v49 }
 0x720   :  { %v822_v50 = vpop.eup %821 }
 0x721   :  { %586 = vst.msk [vmem:[#allocation2 + $0x8] sm:$0x30] %vm206_vm7, %v822_v50  ;;  %v588_v51 = vrot.slane %v822_v50, 4 }
 0x723   :  { %775 = vmatmul.msk.f32.vlgmr.msrb.gmra.mxu0 %vm119_vm5, %v588_v51 }
 0x7a0   :  { %v608_v52 = vpop.f32.mrf.mxu0 }
 0x7a1   :  { %v612_v53 = vrot.slane %v608_v52, 2 }
 0x7a3   :  { %v614_v54 = vadd.f32 %v612_v53, %v387_v35 }
 0x7a5   :  { %823 = vtanh.f32 %v614_v54 }
 0x7ab   :  { %v824_v55 = vpop.eup %823 }
 0x7ac   :  { %616 = vst.msk [vmem:[#allocation2 + $0x8] sm:$0xc0] %vm237_vm8, %v824_v55 }
 0x7b3   :  { %v618_v56 = vld [vmem:[#allocation2 + $0x8] sm:$0xff] }
 0x7b4   :  { %777 = vmatmul.msk.f32.gmra.mxu1 %vm119_vm5, %v618_v56 }
 0x831   :  { %v653_v57 = vpop.f32.mrf.mxu1 }
 0x832   :  { %v654_v58 = vadd.f32 %v791_v38, %v653_v57 }
 0x834   :  { %665 = vperm.xlu1 %784, %v654_v58  }
 0x83c   :  { %785 = vset.pattern.permute.xlu1 %v857_v33 }
 0x83d   :  { %677 = vperm.xlu1 %785, %v654_v58  }
 0x8a6   :  { %v666_v60 = vpop.permute.xlu1 %665 }
 0x8a7   :  { %v669_v4 = vmul.f32 %v666_v60, %v657_v63 }
 0x8af   :  { %v678_v2 = vpop.permute.xlu1 %677 }
 0x8b0   :  { %v681_v5 = vmul.f32 %v678_v2, %v671_v0 }
 0x8b2   :  { %v683_v7 = vadd.f32 %v681_v5, %v669_v4 }
 0x8b4   :  { %707 = vmatpush.msrb.mxu2 %v683_v7 }
 0x8b6   :  { %708 = vmatpush.msrb.mxu2 %v682_v8 }
 0x8b7   :  { %778 = vmatmul.msk.f32.vlgmr.msrb.gmra.mxu2 %vm689_vm9, %v684_v9 }
 0x93a   :  { %v710_v11 = vpop.f32.mrf.mxu2 }
 0x93b   :  { %v711_v12 = vadd.f32 %v792_v10, %v710_v11 }
 0x93d   :  { %v714_v13 = vsel %vm713_vm10, %v711_v12, -inf }
 0x93e   :  { %715 = vmax.xlane.f32.xlu0 %v714_v13 }
 0x9b1   :  { %v716_v14 = vpop.xlane.xlu0 %715 }
 0x9b2   :  { %v717_v15 = vsub.f32 %v711_v12, %v716_v14 }
 0x9b4   :  { %v718_v16 = vmul.f32 1.442695, %v717_v15 }
 0x9b6   :  { %825 = vpow2.f32 %v718_v16 }
 0x9bc   :  { %v826_v17 = vpop.eup %825 }
 0x9bd   :  { %v720_v18 = vsel %vm713_vm10, %v826_v17, 0.0 }
 0x9be   :  { %721 = vadd.xlane.f32.xlu1 %v720_v18 }
 0xa31   :  { %v722_v19 = vpop.xlane.xlu1 %721 }
 0xa32   :  { %827 = vrcp.f32 %v722_v19  ;;  %v734_v23 = vand.u32 2147483648, %v722_v19  ;;  %v732_v25 = vand.u32 2147483647, %v722_v19  ;;  %vm728_vm12 = vweird.f32 %v722_v19 }
 0xa34   :  { %v735_v27 = vor.u32 1.1754944e-38, %v734_v23  ;;  %vm733_vm14 = vcmp.eq.f32.partialorder %v732_v25, 8.507059e+37 }
 0xa38   :  { %v828_v20 = vpop.eup %827 }
 0xa39   :  { %v724_v21 = vmul.f32 %v828_v20, %v722_v19  ;;  %vm729_vm11 = vweird.f32 %v828_v20 }
 0xa3a   :  { %vm730_vm13 = vmor %vm728_vm12, %vm729_vm11 }
 0xa3b   :  { %v725_v22 = vsub.f32 1.0, %v724_v21 }
 0xa3d   :  { %v726_v24 = vmul.f32 %v828_v20, %v725_v22 }
 0xa3f   :  { %v727_v26 = vadd.f32 %v828_v20, %v726_v24 }
 0xa41   :  { %v731_v28 = vsel %vm730_vm13, %v828_v20, %v727_v26 }
 0xa42   :  { %v736_v29 = vsel %vm733_vm14, %v735_v27, %v731_v28 }
 0xa43   :  { %v737_v30 = vmul.f32 %v826_v17, %v736_v29 }
 0xa45   :  { %738 = vst.msk [vmem:[#allocation3] sm:$0x3] %vm713_vm10, %v737_v30 }
 0xa46   :  { %749 = dma.vmem_to_hbm [thread:$0]  %s745_s11, 32, %s747_s29, [#allocation4]  }
 0xa47   :  { %853 = dma.done.wait [#allocation4], 32  }
 0xa48   :  { %854 = vsyncadd [#allocation4], 4294967264 }
 0xa49   :  { %754 = vsyncpa [#allocation4], 1 }

</bundles_post_ra>
